<compile_context>
chip_gen: v6e
topology: v6e:2x2x1
jax: 0.10.0
libtpu: 0.0.40
codegen_flags: <defaults>
</compile_context>

<pallas_src>
import math
import functools

import jax
import jax.numpy as jnp
from jax.experimental import pallas as pl
from jax.experimental.pallas import tpu as pltpu

_LANES = 128
_SUBLANES = 8
_SLAB_WIDTH = 1024                       # 8 * 128: wide unmasked stores
_TARGET_BLOCK_BYTES = 2 * 1024 * 1024    # ~2 MiB per block (see header comment)


def _clipped_gelu_kernel(x_ref, o_ref, *, min_val, max_val):
    x = x_ref[...].astype(jnp.float32)
    # Exact (erf-based) GELU, matching torch.nn.functional.gelu's default.
    g = x * 0.5 * (1.0 + jax.lax.erf(x * (1.0 / math.sqrt(2.0))))
    o_ref[...] = jnp.clip(g, min_val, max_val).astype(o_ref.dtype)


def clipped_gelu(x, min_val: float, max_val: float):
    """Pallas implementation of ClippedGELUActivation.forward."""
    if min_val > max_val:
        raise ValueError(f"min should be < max (got min: {min_val}, max: {max_val})")

    orig_shape = x.shape
    orig_dtype = x.dtype
    total = x.size

    x_flat = x.reshape(-1)
    # Pad the flat array up to a multiple of 8*128 = 1024 elements so the slab
    # tiles cleanly.  Aligned shapes (total % 1024 == 0) take the copy-free path.
    pad = (-total) % (_SUBLANES * _LANES)
    if pad:
        # TODO(synk): a masked tail block would avoid this full-copy pad path;
        # production shapes with total % 1024 == 0 never hit it.
        x_flat = jnp.pad(x_flat, (0, pad))
    padded = total + pad

    rows = padded // _SLAB_WIDTH
    x2d = x_flat.reshape(rows, _SLAB_WIDTH)

    itemsize = jnp.dtype(orig_dtype).itemsize
    max_block_rows = max(
        _SUBLANES,
        (_TARGET_BLOCK_BYTES // (_SLAB_WIDTH * itemsize)) // _SUBLANES * _SUBLANES,
    )
    if rows < 2 * _SUBLANES:
        # Tiny input: single full-extent block (row dim equal to full array dim,
        # so the (8,128) divisibility rule is satisfied).
        block_rows = rows
    else:
        # Cap at ~2 MiB, but never collapse to a single grid step: >= 2
        # "parallel" iterations let v7x shard across its 2 TensorCores.
        block_rows = min(max_block_rows, _SUBLANES * pl.cdiv(rows, 2 * _SUBLANES))
    grid = (pl.cdiv(rows, block_rows),)

    kernel = functools.partial(
        _clipped_gelu_kernel, min_val=float(min_val), max_val=float(max_val)
    )

    out2d = pl.pallas_call(
        kernel,
        out_shape=jax.ShapeDtypeStruct((rows, _SLAB_WIDTH), orig_dtype),
        grid=grid,
        in_specs=[pl.BlockSpec((block_rows, _SLAB_WIDTH), lambda i: (i, 0))],
        out_specs=pl.BlockSpec((block_rows, _SLAB_WIDTH), lambda i: (i, 0)),
        compiler_params=pltpu.CompilerParams(dimension_semantics=("parallel",)),
    )(x2d)

    out_flat = out2d.reshape(-1)
    if pad:
        out_flat = out_flat[:total]
    return out_flat.reshape(orig_shape)


def _reference(x, min_val, max_val):
    g = x.astype(jnp.float32) * 0.5 * (1.0 + jax.lax.erf(x.astype(jnp.float32) / math.sqrt(2.0)))
    return jnp.clip(g, min_val, max_val).astype(x.dtype)


if __name__ == "__main__":
    key = jax.random.PRNGKey(0)

    # NCHW-like small input, scaled so the gelu_10 clip bounds are exercised.
    x = jax.random.normal(key, (2, 4, 16, 16), dtype=jnp.float32) * 8.0
    min_val, max_val = -10.0, 10.0   # 'gelu_10' configuration from ACT2CLS

    out = clipped_gelu(x, min_val, max_val)
    jax.block_until_ready(out)
    ref = _reference(x, min_val, max_val)
    assert out.shape == x.shape and out.dtype == x.dtype
    assert jnp.max(jnp.abs(out - ref)) < 1e-5

    # Ragged (non-1024-aligned) shape to exercise the padded tail path.
    x2 = jax.random.normal(jax.random.PRNGKey(1), (3, 5, 7), dtype=jnp.float32) * 8.0
    out2 = clipped_gelu(x2, -3.0, 3.0)
    jax.block_until_ready(out2)
    ref2 = _reference(x2, -3.0, 3.0)
    assert out2.shape == x2.shape and out2.dtype == x2.dtype
    assert jnp.max(jnp.abs(out2 - ref2)) < 1e-5

    print("KERNEL_OK")
</pallas_src>

<mosaic_0001>
module attributes {stable_mosaic.version = 11 : i64} {
  func.func @_clipped_gelu_kernel(%arg0: i32, %arg1: memref<2x1024xf32, #tpu.memory_space<vmem>>, %arg2: memref<2x1024xf32, #tpu.memory_space<vmem>>) attributes {dimension_semantics = [#tpu.dimension_semantics<parallel>], iteration_bounds = array<i64: 1>, scalar_prefetch = 0 : i64, scratch_operands = 0 : i64, tpu.core_type = #tpu.core_type<tc>, window_params = [{transform_indices = @transform_0, window_bounds = array<i64: 2, 1024>}, {transform_indices = @transform_1, window_bounds = array<i64: 2, 1024>}]} {
    %c0 = arith.constant 0 : index
    %c0_0 = arith.constant 0 : index
    %0 = vector.load %arg1[%c0, %c0_0] : memref<2x1024xf32, #tpu.memory_space<vmem>>, vector<2x1024xf32>
    %cst = arith.constant 5.000000e-01 : f32
    %1 = vector.broadcast %cst : f32 to vector<2x1024xf32>
    %2 = arith.mulf %0, %1 : vector<2x1024xf32>
    %cst_1 = arith.constant 0.707106769 : f32
    %3 = vector.broadcast %cst_1 : f32 to vector<2x1024xf32>
    %4 = arith.mulf %0, %3 : vector<2x1024xf32>
    %5 = math.erf %4 : vector<2x1024xf32>
    %cst_2 = arith.constant 1.000000e+00 : f32
    %6 = vector.broadcast %cst_2 : f32 to vector<2x1024xf32>
    %7 = arith.addf %6, %5 : vector<2x1024xf32>
    %8 = arith.mulf %2, %7 : vector<2x1024xf32>
    %cst_3 = arith.constant -1.000000e+01 : f32
    %cst_4 = arith.constant 1.000000e+01 : f32
    %9 = vector.broadcast %cst_3 : f32 to vector<2x1024xf32>
    %10 = arith.maximumf %9, %8 : vector<2x1024xf32>
    %11 = vector.broadcast %cst_4 : f32 to vector<2x1024xf32>
    %12 = arith.minimumf %11, %10 : vector<2x1024xf32>
    %c0_5 = arith.constant 0 : index
    %c0_6 = arith.constant 0 : index
    %13 = vector.load %arg2[%c0_5, %c0_6] : memref<2x1024xf32, #tpu.memory_space<vmem>>, vector<2x1024xf32>
    tpu.vector_store %arg2[%c0_5, %c0_6], %12 {strides = array<i32>} : memref<2x1024xf32, #tpu.memory_space<vmem>>, vector<2x1024xf32>,
    return
  }
  func.func @transform_0(%arg0: i32) -> (i32, i32) {
    %c0_i32 = arith.constant 0 : i32
    %c0_i32_0 = arith.constant 0 : i32
    return %arg0, %c0_i32 : i32, i32
  }
  func.func @transform_1(%arg0: i32) -> (i32, i32) {
    %c0_i32 = arith.constant 0 : i32
    %c0_i32_0 = arith.constant 0 : i32
    return %arg0, %c0_i32 : i32, i32
  }
}

</mosaic_0001>

<bundles_post_ra>
// kernel: tpu_custom_call.1
= control target key start
LH: loop header
LB: loop body
LE: loop exit
PB: predicated region body
PF: predicated region fallthrough
CT: control target
= control target key end

     0   :  { %6 = vsyncpa [#allocation3], 0  ;;  %s124_s0 = inlined_call_operand.hbm [shape: f32[2,1024], index: 0, kind: input, shape index: {}]   ;;  %s125_s1 = inlined_call_operand.hbm [shape: f32[2,1024], index: 1, kind: output, shape index: {}]  }
   0x1   :  { %7 = vsyncpa [#allocation4], 0  ;;  %s106_s6 = smov [#allocation2]  }
   0x2   :  { %s14_s7 = sshll.u32 %s106_s6, 4  ;;  %s15_s7 = int_to_ptr.vmem [resolvable:$true] %s14_s7 }
   0x3   :  { %s70_s8 = scalar_lea.vmem %s15_s7, 256  ;;  %p75_p1 = scmp.lt.s32.totalorder %s15_s7, %s15_s7 }
   0x4   :  { %p71_p0 = scmp.ne.s32.totalorder %s15_s7, %s70_s8  ;;  %p76_p2 = scmp.lt.s32.totalorder %s70_s8, %s70_s8 }
   0x6   :  { %p77_p3 = por %p76_p2, %p75_p1 }
   0x8   :  { %p78_p4 = pnand %p77_p3, %p71_p0 }
   0xa   :  { %81 = shalt.err (!%p78_p4)
}
   0xb   :  { %17 = dma.hbm_to_vmem [thread:$0]  %s124_s0, 256, %s15_s7, [#allocation3]  }
   0xc   :  { %102 = dma.done.wait [#allocation3], 256  }
   0xd   :  { %103 = vsyncadd [#allocation3], 4294967040  ;;  %v21_v0 = vld [vmem:[#allocation2] sm:$0xff]  ;;  %v22_v1 = vld [vmem:[#allocation2 + $0x8] sm:$0xff]  ;;  %s107_s11 = smov [#allocation5]  }
   0xe   :  { %v25_v2 = vmul.f32 0.70710677, %v21_v0  ;;  %v26_v3 = vmul.f32 0.70710677, %v22_v1  ;;  %v23_v4 = vmul.f32 0.5, %v21_v0  ;;  %v24_v6 = vmul.f32 0.5, %v22_v1 }
   0xf   :  { %s45_s12 = sshll.u32 %s107_s11, 4  ;;  %s46_s12 = int_to_ptr.vmem [resolvable:$true] %s45_s12 }
  0x10   :  { %58 = verf.f32 %v25_v2  ;;  %s82_s0 = scalar_lea.vmem %s46_s12, 256  ;;  %p87_p6 = scmp.lt.s32.totalorder %s46_s12, %s46_s12 }
  0x11   :  { %60 = verf.f32 %v26_v3  ;;  %p83_p5 = scmp.ne.s32.totalorder %s46_s12, %s82_s0  ;;  %p88_p7 = scmp.lt.s32.totalorder %s82_s0, %s82_s0 }
  0x13   :  { %p89_p8 = por %p88_p7, %p87_p6 }
  0x15   :  { %p90_p9 = pnand %p89_p8, %p83_p5 }
  0x1d   :  { %v59_v5 = vpop.eup %58 }
  0x1e   :  { %v61_v7 = vpop.eup %60  ;;  %v29_v8 = vadd.f32 1.0, %v59_v5 }
  0x1f   :  { %v30_v9 = vadd.f32 1.0, %v61_v7 }
  0x20   :  { %v31_v10 = vmul.f32 %v29_v8, %v23_v4 }
  0x21   :  { %v32_v11 = vmul.f32 %v30_v9, %v24_v6 }
  0x22   :  { %v54_v12 = vclamps-f32 %v31_v10, 10.0 }
  0x23   :  { %v55_v13 = vclamps-f32 %v32_v11, 10.0 }
  0x24   :  { %37 = vst [vmem:[#allocation5] sm:$0xff] %v54_v12 }
  0x25   :  { %38 = vst [vmem:[#allocation5 + $0x8] sm:$0xff] %v55_v13 }
  0x26   :  { %93 = shalt.err (!%p90_p9)
}
  0x27   :  { %48 = dma.vmem_to_hbm [thread:$0]  %s46_s12, 256, %s125_s1, [#allocation4]  }
  0x28   :  { %104 = dma.done.wait [#allocation4], 256  }
  0x29   :  { %105 = vsyncadd [#allocation4], 4294967040 }
  0x2a   :  { %52 = vsyncpa [#allocation3], 1 }
  0x2b   :  { %53 = vsyncpa [#allocation4], 1 }

</bundles_post_ra>
